<compile_context>
chip_gen: v6e
topology: v6e:2x2x1
jax: 0.10.0
libtpu: 0.0.40
codegen_flags: <defaults>
</compile_context>

<pallas_src>
import jax
import jax.numpy as jnp
from jax.experimental import pallas as pl
from jax.experimental.pallas import tpu as pltpu

# ----------------------------------------------------------------------------
# Module-level constants that the PyTorch file imports from its config
# (initialized deterministically in-script).
# ----------------------------------------------------------------------------
INPUT_SIZE = (128, 128)          # (H, W) of network input
NUM_CELL_ANCHOR = 3
NUM_CLASSFICATIONS = 4
LAMBDA_COORD = 5.0
LAMBDA_CLASS = 1.0
LAMBDA_CONF = 1.0
THRESH_GTBOX_ANCHOR_IOU = 0.2
THRESH_IGNORE = 0.5

# (3 scales, NUM_CELL_ANCHOR, [w, h]) in INPUT_SIZE units.
BOX_ANCHORS = jnp.array(
    [
        [[3.0, 4.0], [5.0, 9.0], [10.0, 7.0]],
        [[9.0, 19.0], [19.0, 14.0], [18.0, 37.0]],
        [[36.0, 28.0], [48.0, 61.0], [115.0, 100.0]],
    ],
    dtype=jnp.float32,
)

_LANES = 128
_MAX_BLOCK_ROWS = 512   # (512,128) f32 = 256 KiB/buffer; 3 inputs x 2 bufs = 1.5 MiB
#                         -> safely inside scoped VMEM on v5e/v6e/v7x.


def _cdiv(a, b):
    return -(-a // b)


def _round_up(a, b):
    return _cdiv(a, b) * b


# ----------------------------------------------------------------------------
# Pallas kernel: masked BCE partial reduction over one (block_rows, 128) tile.
# Emits lane-dense (8,128) partial sums per grid step; the tiny final reduce
# happens in the JAX wrapper.  No carried accumulator -> grid axis is parallel.
# ----------------------------------------------------------------------------
def _masked_bce_kernel(p_ref, t_ref, m_ref, s_ref, c_ref):
    p = p_ref[...]                         # (block_rows, 128)
    t = t_ref[...]
    m = m_ref[...]
    # BCELoss semantics: -(t*log(p) + (1-t)*log(1-p)), log clamped at -100.
    logp = jnp.maximum(jnp.log(jnp.maximum(p, 1e-30)), -100.0)
    log1mp = jnp.maximum(jnp.log(jnp.maximum(1.0 - p, 1e-30)), -100.0)
    bce = -(t * logp + (1.0 - t) * log1mp)
    r = p.shape[0] // 8
    # vreg-aligned reduction: (r,8,128) sum over axis 0 is pure VALU adds.
    s_ref[...] = jnp.sum((bce * m).reshape(r, 8, _LANES), axis=0)[None]
    c_ref[...] = jnp.sum(m.reshape(r, 8, _LANES), axis=0)[None]


def _pad_flat(x, padded_size, value):
    flat = x.reshape(-1).astype(jnp.float32)
    return jnp.pad(flat, (0, padded_size - flat.shape[0]), constant_values=value)


def fused_masked_bce_mean(preds, targets, masks):
    """Per-scale mean of BCE(pred, target) over masked elements.

    All scales are concatenated into one lane-dense (rows, 128) slab and
    reduced by a single pallas_call; each scale is padded to a whole number of
    blocks so per-scale sums are recovered from static block ranges.
    Padding invariant: mask padded with 0 (so the pred padding value 0.5 is
    never counted).
    """
    sizes = [int(p.size) for p in preds]
    rows_per_scale = [_cdiv(s, _LANES) for s in sizes]
    block_rows = min(_MAX_BLOCK_ROWS, _round_up(max(rows_per_scale), 8))
    tile_elems = block_rows * _LANES
    blocks_per_scale = [_cdiv(s, tile_elems) for s in sizes]
    padded_sizes = [nb * tile_elems for nb in blocks_per_scale]
    num_blocks = sum(blocks_per_scale)

    p_flat = jnp.concatenate(
        [_pad_flat(p, ps, 0.5) for p, ps in zip(preds, padded_sizes)])
    t_flat = jnp.concatenate(
        [_pad_flat(t, ps, 0.0) for t, ps in zip(targets, padded_sizes)])
    m_flat = jnp.concatenate(
        [_pad_flat(m, ps, 0.0) for m, ps in zip(masks, padded_sizes)])

    total_rows = num_blocks * block_rows
    p2 = p_flat.reshape(total_rows, _LANES)
    t2 = t_flat.reshape(total_rows, _LANES)
    m2 = m_flat.reshape(total_rows, _LANES)

    in_spec = pl.BlockSpec((block_rows, _LANES), lambda i: (i, 0))
    out_spec = pl.BlockSpec((1, 8, _LANES), lambda i: (i, 0, 0))

    s_part, c_part = pl.pallas_call(
        _masked_bce_kernel,
        out_shape=(
            jax.ShapeDtypeStruct((num_blocks, 8, _LANES), jnp.float32),
            jax.ShapeDtypeStruct((num_blocks, 8, _LANES), jnp.float32),
        ),
        grid=(num_blocks,),
        in_specs=[in_spec, in_spec, in_spec],
        out_specs=(out_spec, out_spec),
        compiler_params=pltpu.CompilerParams(
            dimension_semantics=("parallel",)),
    )(p2, t2, m2)

    # Per-scale final reduction over that scale's (static) block range.
    means = []
    start = 0
    for nb in blocks_per_scale:
        s_k = jnp.sum(s_part[start:start + nb])
        c_k = jnp.sum(c_part[start:start + nb])
        means.append(jnp.where(c_k > 0, s_k / jnp.maximum(c_k, 1.0), 0.0))
        start += nb
    return means


# ----------------------------------------------------------------------------
# Per-matched-target losses (MSE on boxes, softmax-CE on classes) — plain JAX.
# Only ~N (<=num labels) rows; XLA fuses this with the surrounding gathers.
# ----------------------------------------------------------------------------
def target_losses(box_pred, box_tgt, logits, onehot, sel):
    sel_f = sel.astype(jnp.float32)
    # Mask BEFORE squaring so -inf box targets of unselected (degenerate-box)
    # labels cannot produce inf*0 = NaN.
    d = jnp.where(sel[:, None], box_pred - box_tgt, 0.0)         # (N, 4)
    mse_sum = jnp.sum(d * d)
    log_softmax = jax.nn.log_softmax(logits.astype(jnp.float32), axis=-1)
    ce_row = -jnp.sum(onehot * log_softmax, axis=-1)             # (N,)
    ce_sum = jnp.sum(jnp.where(sel, ce_row, 0.0))
    n_sel = jnp.sum(sel_f)
    return mse_sum, ce_sum, n_sel


# ----------------------------------------------------------------------------
# buildTargets / per-scale glue (static-shape masking instead of bool filtering)
# ----------------------------------------------------------------------------
def box_xy2cwh(xyxy):
    x1, y1, x2, y2 = xyxy[:, 0], xyxy[:, 1], xyxy[:, 2], xyxy[:, 3]
    return jnp.stack([(x1 + x2) * 0.5, (y1 + y2) * 0.5, x2 - x1, y2 - y1], axis=1)


def anchor_gt_iou(gt_cwh, anchors):
    gt_area = (gt_cwh[:, 2] * gt_cwh[:, 3]).reshape(-1, 1)
    an_area = (anchors[:, 0] * anchors[:, 1]).reshape(1, -1)
    rate = gt_area / an_area
    return jnp.where(rate < 1.0, rate, 1.0 / rate)


def per_scale_components(predict, labels, anchors):
    """Returns (loss_box, loss_class, target_conf, conf_mask_f32) for one scale."""
    B, A, H, W, _ = predict.shape
    recept = INPUT_SIZE[1] / H
    n_lbl = labels.shape[0]

    cwh = box_xy2cwh(labels[:, 2:6])
    ious = anchor_gt_iou(cwh, anchors)                    # (N, A)
    max_ious = jnp.max(ious, axis=1)
    map_anchors = jnp.argmax(ious, axis=1)
    sel = max_ious > THRESH_GTBOX_ANCHOR_IOU              # (N,) static-shape mask

    img_id = jnp.clip(labels[:, 0].astype(jnp.int32), 0, B - 1)
    cls_id = jnp.clip(labels[:, 1].astype(jnp.int32), 0, NUM_CLASSFICATIONS - 1)

    wh = jnp.log(cwh[:, 2:4] / anchors[map_anchors])
    xy = cwh[:, 0:2] / recept
    grid_xy = xy.astype(jnp.int32)                        # trunc == floor (coords >= 0)
    txy = xy - grid_xy.astype(jnp.float32)
    gx = jnp.clip(grid_xy[:, 0], 0, W - 1)
    gy = jnp.clip(grid_xy[:, 1], 0, H - 1)
    target_boxs = jnp.concatenate([txy, wh], axis=1)      # (N, 4)

    # conf_mask: all True; ignore anchors with iou > THRESH_IGNORE at target
    # cells of selected labels; then force True at matched cells.
    conf_mask = jnp.ones((B, A, H, W), dtype=jnp.int32)
    if THRESH_IGNORE < 1:
        anc = jnp.broadcast_to(jnp.arange(A)[None, :], (n_lbl, A))
        ign_val = jnp.where(sel[:, None] & (ious > THRESH_IGNORE), 0, 1).astype(jnp.int32)
        conf_mask = conf_mask.at[
            img_id[:, None], anc, gy[:, None], gx[:, None]
        ].min(ign_val)
    conf_mask = conf_mask.at[img_id, map_anchors, gy, gx].max(sel.astype(jnp.int32))

    target_conf = jnp.zeros((B, A, H, W), dtype=jnp.float32)
    target_conf = target_conf.at[img_id, map_anchors, gy, gx].max(sel.astype(jnp.float32))

    # Gather matched predictions (tiny, data-dependent -> plain JAX glue).
    obj_pred = predict[img_id, map_anchors, gy, gx]       # (N, 5+C)
    onehot = jax.nn.one_hot(cls_id, NUM_CLASSFICATIONS, dtype=jnp.float32)

    mse_sum, ce_sum, n_sel = target_losses(
        obj_pred[:, 0:4].astype(jnp.float32), target_boxs,
        obj_pred[:, 5:], onehot, sel)

    loss_box = jnp.where(n_sel > 0, mse_sum / jnp.maximum(n_sel * 4.0, 1.0), 0.0)
    loss_class = jnp.where(n_sel > 0, ce_sum / jnp.maximum(n_sel, 1.0), 0.0)
    return loss_box, loss_class, target_conf, conf_mask.astype(jnp.float32)


@jax.jit
def yolo_loss(predict1, predict2, predict3, labels):
    preds = (predict1, predict2, predict3)
    comps = [per_scale_components(p, labels, BOX_ANCHORS[i])
             for i, p in enumerate(preds)]

    # One fused masked-BCE pallas_call across all three scales.
    loss_confs = fused_masked_bce_mean(
        [p[..., 4] for p in preds],
        [c[2] for c in comps],
        [c[3] for c in comps],
    )

    total = jnp.float32(0.0)
    vec = jnp.zeros((3,), jnp.float32)
    for p, (loss_box, loss_class, _, _), loss_conf in zip(preds, comps, loss_confs):
        k = p.shape[0]
        total = total + k * (loss_box * LAMBDA_COORD
                             + loss_class * LAMBDA_CLASS
                             + loss_conf * LAMBDA_CONF)
        vec = vec + jnp.stack([loss_box, loss_class, loss_conf])
    return total, vec


# ----------------------------------------------------------------------------
if __name__ == "__main__":
    key = jax.random.PRNGKey(0)
    k1, k2, k3 = jax.random.split(key, 3)
    B, A, C = 2, NUM_CELL_ANCHOR, NUM_CLASSFICATIONS
    D = 5 + C

    def make_pred(k, hw):
        x = jax.random.normal(k, (B, A, hw, hw, D), dtype=jnp.float32)
        # the confidence channel is "stc" (already sigmoid-activated) in the model
        return x.at[..., 4].set(jax.nn.sigmoid(x[..., 4]))

    predict1 = make_pred(k1, 16)   # receptive field 8
    predict2 = make_pred(k2, 8)    # receptive field 16
    predict3 = make_pred(k3, 4)    # receptive field 32

    # labels: [imgId, class, x1, y1, x2, y2]  (coords already in INPUT_SIZE units)
    labels = jnp.array(
        [
            [0.0, 1.0, 10.0, 20.0, 50.0, 70.0],
            [0.0, 3.0, 5.0, 5.0, 30.0, 40.0],
            [1.0, 0.0, 60.0, 60.0, 120.0, 120.0],
            [1.0, 2.0, 30.0, 10.0, 44.0, 26.0],
            [0.0, 2.0, 70.0, 80.0, 100.0, 126.0],
        ],
        dtype=jnp.float32,
    )

    loss, loss_vec = yolo_loss(predict1, predict2, predict3, labels)
    jax.block_until_ready((loss, loss_vec))
    print("KERNEL_OK")
</pallas_src>

<mosaic_0001>
module attributes {stable_mosaic.version = 11 : i64} {
  func.func @_masked_bce_kernel(%arg0: i32, %arg1: memref<16x128xf32, #tpu.memory_space<vmem>>, %arg2: memref<16x128xf32, #tpu.memory_space<vmem>>, %arg3: memref<16x128xf32, #tpu.memory_space<vmem>>, %arg4: memref<1x8x128xf32, #tpu.memory_space<vmem>>, %arg5: memref<1x8x128xf32, #tpu.memory_space<vmem>>) attributes {dimension_semantics = [#tpu.dimension_semantics<parallel>], iteration_bounds = array<i64: 3>, scalar_prefetch = 0 : i64, scratch_operands = 0 : i64, tpu.core_type = #tpu.core_type<tc>, window_params = [{transform_indices = @transform_0, window_bounds = array<i64: 16, 128>}, {transform_indices = @transform_1, window_bounds = array<i64: 16, 128>}, {transform_indices = @transform_2, window_bounds = array<i64: 16, 128>}, {transform_indices = @transform_3, window_bounds = array<i64: 1, 8, 128>}, {transform_indices = @transform_4, window_bounds = array<i64: 1, 8, 128>}]} {
    %c0 = arith.constant 0 : index
    %c0_0 = arith.constant 0 : index
    %0 = vector.load %arg1[%c0, %c0_0] : memref<16x128xf32, #tpu.memory_space<vmem>>, vector<16x128xf32>
    %c0_1 = arith.constant 0 : index
    %c0_2 = arith.constant 0 : index
    %1 = vector.load %arg2[%c0_1, %c0_2] : memref<16x128xf32, #tpu.memory_space<vmem>>, vector<16x128xf32>
    %c0_3 = arith.constant 0 : index
    %c0_4 = arith.constant 0 : index
    %2 = vector.load %arg3[%c0_3, %c0_4] : memref<16x128xf32, #tpu.memory_space<vmem>>, vector<16x128xf32>
    %cst = arith.constant 1.000000e-30 : f32
    %3 = vector.broadcast %cst : f32 to vector<16x128xf32>
    %4 = arith.maximumf %0, %3 : vector<16x128xf32>
    %5 = math.log %4 : vector<16x128xf32>
    %cst_5 = arith.constant -1.000000e+02 : f32
    %6 = vector.broadcast %cst_5 : f32 to vector<16x128xf32>
    %7 = arith.maximumf %5, %6 : vector<16x128xf32>
    %cst_6 = arith.constant 1.000000e+00 : f32
    %8 = vector.broadcast %cst_6 : f32 to vector<16x128xf32>
    %9 = arith.subf %8, %0 : vector<16x128xf32>
    %cst_7 = arith.constant 1.000000e-30 : f32
    %10 = vector.broadcast %cst_7 : f32 to vector<16x128xf32>
    %11 = arith.maximumf %9, %10 : vector<16x128xf32>
    %12 = math.log %11 : vector<16x128xf32>
    %cst_8 = arith.constant -1.000000e+02 : f32
    %13 = vector.broadcast %cst_8 : f32 to vector<16x128xf32>
    %14 = arith.maximumf %12, %13 : vector<16x128xf32>
    %15 = arith.mulf %1, %7 : vector<16x128xf32>
    %cst_9 = arith.constant 1.000000e+00 : f32
    %16 = vector.broadcast %cst_9 : f32 to vector<16x128xf32>
    %17 = arith.subf %16, %1 : vector<16x128xf32>
    %18 = arith.mulf %17, %14 : vector<16x128xf32>
    %19 = arith.addf %15, %18 : vector<16x128xf32>
    %cst_10 = arith.constant 0.000000e+00 : f32
    %20 = vector.broadcast %cst_10 : f32 to vector<16x128xf32>
    %21 = arith.subf %20, %19 : vector<16x128xf32>
    %22 = arith.mulf %21, %2 : vector<16x128xf32>
    %23 = vector.shape_cast %22 : vector<16x128xf32> to vector<2x8x128xf32>
    %cst_11 = arith.constant dense<0.000000e+00> : vector<8x128xf32>
    %24 = vector.multi_reduction <add>, %23, %cst_11 [0] : vector<2x8x128xf32> to vector<8x128xf32>
    %25 = vector.shape_cast %24 : vector<8x128xf32> to vector<1x8x128xf32>
    %c0_12 = arith.constant 0 : index
    %c0_13 = arith.constant 0 : index
    %c0_14 = arith.constant 0 : index
    %26 = vector.load %arg4[%c0_12, %c0_13, %c0_14] : memref<1x8x128xf32, #tpu.memory_space<vmem>>, vector<1x8x128xf32>
    tpu.vector_store %arg4[%c0_12, %c0_13, %c0_14], %25 {strides = array<i32>} : memref<1x8x128xf32, #tpu.memory_space<vmem>>, vector<1x8x128xf32>,
    %27 = vector.shape_cast %2 : vector<16x128xf32> to vector<2x8x128xf32>
    %cst_15 = arith.constant dense<0.000000e+00> : vector<8x128xf32>
    %28 = vector.multi_reduction <add>, %27, %cst_15 [0] : vector<2x8x128xf32> to vector<8x128xf32>
    %29 = vector.shape_cast %28 : vector<8x128xf32> to vector<1x8x128xf32>
    %c0_16 = arith.constant 0 : index
    %c0_17 = arith.constant 0 : index
    %c0_18 = arith.constant 0 : index
    %30 = vector.load %arg5[%c0_16, %c0_17, %c0_18] : memref<1x8x128xf32, #tpu.memory_space<vmem>>, vector<1x8x128xf32>
    tpu.vector_store %arg5[%c0_16, %c0_17, %c0_18], %29 {strides = array<i32>} : memref<1x8x128xf32, #tpu.memory_space<vmem>>, vector<1x8x128xf32>,
    return
  }
  func.func @transform_0(%arg0: i32) -> (i32, i32) {
    %c0_i32 = arith.constant 0 : i32
    %c0_i32_0 = arith.constant 0 : i32
    return %arg0, %c0_i32 : i32, i32
  }
  func.func @transform_1(%arg0: i32) -> (i32, i32) {
    %c0_i32 = arith.constant 0 : i32
    %c0_i32_0 = arith.constant 0 : i32
    return %arg0, %c0_i32 : i32, i32
  }
  func.func @transform_2(%arg0: i32) -> (i32, i32) {
    %c0_i32 = arith.constant 0 : i32
    %c0_i32_0 = arith.constant 0 : i32
    return %arg0, %c0_i32 : i32, i32
  }
  func.func @transform_3(%arg0: i32) -> (i32, i32, i32) {
    %c0_i32 = arith.constant 0 : i32
    %c0_i32_0 = arith.constant 0 : i32
    %c0_i32_1 = arith.constant 0 : i32
    return %arg0, %c0_i32, %c0_i32_0 : i32, i32, i32
  }
  func.func @transform_4(%arg0: i32) -> (i32, i32, i32) {
    %c0_i32 = arith.constant 0 : i32
    %c0_i32_0 = arith.constant 0 : i32
    %c0_i32_1 = arith.constant 0 : i32
    return %arg0, %c0_i32, %c0_i32_0 : i32, i32, i32
  }
}

</mosaic_0001>

<bundles_post_ra>
// kernel: squeeze.51
= control target key start
LH: loop header
LB: loop body
LE: loop exit
PB: predicated region body
PF: predicated region fallthrough
CT: control target
= control target key end

     0   :  { %vm4_vm0 = vcmask 1047556   ;;  %s169_s14 = smov 96   ;;  %s170_s15 = smov 112   ;;  %vm6_vm1 = vcmask 130048   ;;  %vm21_vm2 = vcmask 1048448   ;;  %vm38_vm3 = vcmask 917248   ;;  %s314_s0 = inlined_call_operand.vmem [shape: f32[2,3,16,16,1], index: 0, kind: input, shape index: {}]   ;;  %s315_s1 = inlined_call_operand.vmem [shape: f32[1536], index: 1, kind: output, shape index: {}]  }
   0x1   :  { %v138_v0 = vld [vmem:[%s314_s0 + $0x6] ss:$8 sm:$0xf]   ;;  %v134_v3 = vld [vmem:[%s314_s0 + $0x7] ss:$8 sm:$0xf]  }
   0x2   :  { %v139_v1 = vld [vmem:[%s314_s0 + $0x6] ss:$8 sm:$0xf0]   ;;  %v135_v4 = vld [vmem:[%s314_s0 + $0x7] ss:$8 sm:$0xf0]  }
   0x3   :  { %v35_v2 = vsel %vm4_vm0, %v139_v1, %v138_v0  ;;  %v18_v5 = vsel %vm4_vm0, %v135_v4, %v134_v3  ;;  %v140_v6 = vld [vmem:[%s314_s0 + $0x46] ss:$8 sm:$0xf]   ;;  %v136_v7 = vld [vmem:[%s314_s0 + $0x47] ss:$8 sm:$0xf]  }
   0x4   :  { %36 = vrot.lane.b32.xlu1 %v35_v2, %s169_s14  ;;  %19 = vrot.lane.b32.xlu0 %v18_v5, %s170_s15  ;;  %v142_v8 = vld [vmem:[%s314_s0 + $0x5] ss:$8 sm:$0xf]   ;;  %v146_v12 = vld [vmem:[%s314_s0 + $0x4] ss:$8 sm:$0xf]  }
   0x5   :  { %v143_v9 = vld [vmem:[%s314_s0 + $0x5] ss:$8 sm:$0xf0]   ;;  %v147_v13 = vld [vmem:[%s314_s0 + $0x4] ss:$8 sm:$0xf0]  }
   0x6   :  { %v144_v10 = vld [vmem:[%s314_s0 + $0x45] ss:$8 sm:$0xf]   ;;  %v52_v11 = vsel %vm4_vm0, %v143_v9, %v142_v8  ;;  %s171_s30 = smov 80   ;;  %v69_v16 = vsel %vm4_vm0, %v147_v13, %v146_v12  ;;  %s173_s25 = smov 48   ;;  %vm55_vm4 = vcmask 786048  }
   0x7   :  { %v148_v14 = vld [vmem:[%s314_s0 + $0x44] ss:$8 sm:$0xf]   ;;  %v150_v15 = vld [vmem:[%s314_s0 + $0x3] ss:$8 sm:$0xf]  }
   0x8   :  { %42 = vrot.lane.b32.xlu1 %v140_v6, %s169_s14  ;;  %25 = vrot.lane.b32.xlu0 %v136_v7, %s170_s15  ;;  %v2_v17 = vld [vmem:[%s314_s0] ss:$8 sm:$0xf]   ;;  %v151_v19 = vld [vmem:[%s314_s0 + $0x3] ss:$8 sm:$0xf0]  }
   0x9   :  { %v3_v18 = vld [vmem:[%s314_s0] ss:$8 sm:$0xf0]   ;;  %s172_s14 = smov 64   ;;  %v86_v23 = vsel %vm4_vm0, %v151_v19, %v150_v15  ;;  %s174_s3 = smov 32   ;;  %vm72_vm5 = vcmask 654848  }
   0xa   :  { %v5_v20 = vsel %vm4_vm0, %v3_v18, %v2_v17  ;;  %v132_v21 = vld [vmem:[%s314_s0 + $0x40] ss:$8 sm:$0xf]   ;;  %v152_v22 = vld [vmem:[%s314_s0 + $0x43] ss:$8 sm:$0xf]  }
   0xb   :  { %7 = vst.msk [vmem:[%s315_s1] sm:$0xff] %vm6_vm1, %v5_v20   ;;  %133 = vst.msk [vmem:[%s315_s1 + $0x8] sm:$0xf] %vm6_vm1, %v132_v21   ;;  %v154_v24 = vld [vmem:[%s314_s0 + $0x2] ss:$8 sm:$0xf]  }
   0xc   :  { %59 = vrot.lane.b32.xlu1 %v144_v10, %s171_s30  ;;  %53 = vrot.lane.b32.xlu0 %v52_v11, %s171_s30  ;;  %v155_v25 = vld [vmem:[%s314_s0 + $0x2] ss:$8 sm:$0xf0]   ;;  %v158_v28 = vld [vmem:[%s314_s0 + $0x1] ss:$8 sm:$0xf]  }
   0xd   :  { %v156_v26 = vld [vmem:[%s314_s0 + $0x42] ss:$8 sm:$0xf]   ;;  %v103_v27 = vsel %vm4_vm0, %v155_v25, %v154_v24  ;;  %v159_v29 = vld [vmem:[%s314_s0 + $0x1] ss:$8 sm:$0xf0]  }
   0xe   :  { %v160_v30 = vld [vmem:[%s314_s0 + $0x41] ss:$8 sm:$0xf]   ;;  %v120_v31 = vsel %vm4_vm0, %v159_v29, %v158_v28  ;;  %s175_s0 = smov 16   ;;  %vm89_vm6 = vcmask 523648   ;;  %vm106_vm7 = vcmask 392448  }
   0xf   :  { %vm123_vm8 = vcmask 261248  }
  0x10   :  { %76 = vrot.lane.b32.xlu1 %v148_v14, %s172_s14  ;;  %70 = vrot.lane.b32.xlu0 %v69_v16, %s172_s14 }
  0x14   :  { %93 = vrot.lane.b32.xlu1 %v152_v22, %s173_s25  ;;  %87 = vrot.lane.b32.xlu0 %v86_v23, %s173_s25 }
  0x18   :  { %110 = vrot.lane.b32.xlu1 %v156_v26, %s174_s3  ;;  %104 = vrot.lane.b32.xlu0 %v103_v27, %s174_s3 }
  0x1c   :  { %127 = vrot.lane.b32.xlu1 %v160_v30, %s175_s0  ;;  %121 = vrot.lane.b32.xlu0 %v120_v31, %s175_s0 }
  0x76   :  { %v37_v32 = vpop.permute.xlu1 %36   ;;  %v20_v33 = vpop.permute.xlu0 %19  }
  0x77   :  { %22 = vst.msk [vmem:[%s315_s1] sm:$0xff] %vm21_vm2, %v20_v33  }
  0x78   :  { %39 = vst.msk [vmem:[%s315_s1] sm:$0xff] %vm38_vm3, %v37_v32  }
  0x7a   :  { %v43_v34 = vpop.permute.xlu1 %42   ;;  %v26_v35 = vpop.permute.xlu0 %25  }
  0x7b   :  { %137 = vst.msk [vmem:[%s315_s1 + $0x8] sm:$0xf] %vm21_vm2, %v26_v35  }
  0x7c   :  { %141 = vst.msk [vmem:[%s315_s1 + $0x8] sm:$0xf] %vm38_vm3, %v43_v34  }
  0x7e   :  { %v60_v36 = vpop.permute.xlu1 %59   ;;  %v54_v37 = vpop.permute.xlu0 %53  }
  0x7f   :  { %145 = vst.msk [vmem:[%s315_s1 + $0x8] sm:$0xf] %vm55_vm4, %v60_v36   ;;  %56 = vst.msk [vmem:[%s315_s1] sm:$0xff] %vm55_vm4, %v54_v37  }
  0x82   :  { %v77_v38 = vpop.permute.xlu1 %76   ;;  %v71_v39 = vpop.permute.xlu0 %70  }
  0x83   :  { %149 = vst.msk [vmem:[%s315_s1 + $0x8] sm:$0xf] %vm72_vm5, %v77_v38   ;;  %73 = vst.msk [vmem:[%s315_s1] sm:$0xff] %vm72_vm5, %v71_v39  }
  0x86   :  { %v94_v40 = vpop.permute.xlu1 %93   ;;  %v88_v41 = vpop.permute.xlu0 %87  }
  0x87   :  { %153 = vst.msk [vmem:[%s315_s1 + $0x8] sm:$0xf] %vm89_vm6, %v94_v40   ;;  %90 = vst.msk [vmem:[%s315_s1] sm:$0xff] %vm89_vm6, %v88_v41  }
  0x8a   :  { %v111_v42 = vpop.permute.xlu1 %110   ;;  %v105_v43 = vpop.permute.xlu0 %104  }
  0x8b   :  { %157 = vst.msk [vmem:[%s315_s1 + $0x8] sm:$0xf] %vm106_vm7, %v111_v42   ;;  %107 = vst.msk [vmem:[%s315_s1] sm:$0xff] %vm106_vm7, %v105_v43  }
  0x8e   :  { %v128_v44 = vpop.permute.xlu1 %127   ;;  %v122_v45 = vpop.permute.xlu0 %121  }
  0x8f   :  { %161 = vst.msk [vmem:[%s315_s1 + $0x8] sm:$0xf] %vm123_vm8, %v128_v44   ;;  %124 = vst.msk [vmem:[%s315_s1] sm:$0xff] %vm123_vm8, %v122_v45  }

// kernel: yolo_loss.1
= control target key start
LH: loop header
LB: loop body
LE: loop exit
PB: predicated region body
PF: predicated region fallthrough
CT: control target
= control target key end

     0   :  { %s465_s15 = smov 0   ;;  %s498_s0 = inlined_call_operand.vmem [shape: f32[48,128], index: 0, kind: input, shape index: {}]   ;;  %s499_s1 = inlined_call_operand.vmem [shape: f32[48,128], index: 1, kind: input, shape index: {}]   ;;  %s500_s2 = inlined_call_operand.vmem [shape: f32[48,128], index: 2, kind: input, shape index: {}]   ;;  %s501_s3 = inlined_call_operand.vmem [shape: f32[3,8,128], index: 3, kind: output, shape index: {0}]   ;;  %s502_s4 = inlined_call_operand.vmem [shape: f32[3,8,128], index: 4, kind: output, shape index: {1}]  }
   0x1 LB: > { %s401_s16 = sadd.s32 4294967295, %s438_s15   ;;  %p405_p0 = scmp.ge.s32.totalorder %s438_s15, 1  ;;  %s438_s15 = sphi %s465_s15, %s15_s15  }
   0x2   : > { %p188_p1 = scmp.lt.s32.totalorder %s438_s15, 4 }
   0x4   : > { %p189_p2 = pnand %p405_p0, %p188_p1 }
   0x5   : > { %s406_s17 = sshll.u32 (!%p189_p2), %s401_s16, 1  ;;  %p245_p3 = scmp.lt.s32.totalorder (!%p189_p2), %s401_s16, 2 }
   0x6   : > { %192 = sbr.rel (%p189_p2) target bundleno = 49 (0x31), region = 32  ;;  %p228_p4 = scmp.lt.s32.totalorder (!%p189_p2), %s406_s17, 5 }
   0xb   : > { %s504_s16 = smov (!%p245_p3, %s401_s16), 2  ;;  %s506_s17 = smov (!%p228_p4, %s406_s17), 5 }
   0xc   : > { %s407_s18 = sshll.u32 %s506_s17, 3  ;;  %s412_s22 = sshll.u32 %s504_s16, 3 }
   0xd   : > { %s231_s21 = scalar_lea.vmem %s498_s0, %s407_s18  ;;  %s243_s25 = scalar_lea.vmem %s500_s2, %s407_s18 }
   0xe   : > { %v253_v0 = vld [vmem:[%s231_s21] sm:$0xff]  ;;  %v254_v1 = vld [vmem:[%s231_s21 + $0x8] sm:$0xff]  ;;  %s252_s28 = scalar_lea.vmem %s502_s4, %s412_s22  ;;  %s237_s5 = scalar_lea.vmem %s499_s1, %s407_s18 }
   0xf   : > { %v259_v2 = vmax.f32 %v253_v0, 1e-30  ;;  %v267_v3 = vsub.f32 1.0, %v253_v0  ;;  %v257_v4 = vld [vmem:[%s243_s25] sm:$0xff]  ;;  %v258_v5 = vld [vmem:[%s243_s25 + $0x8] sm:$0xff]  ;;  %v268_v7 = vsub.f32 1.0, %v254_v1  ;;  %s248_s8 = scalar_lea.vmem %s501_s3, %s412_s22 }
  0x10   : > { %v260_v6 = vmax.f32 %v254_v1, 1e-30  ;;  %v291_v9 = vadd.f32 %v258_v5, %v257_v4  ;;  %v255_v12 = vld [vmem:[%s237_s5] sm:$0xff]  ;;  %v256_v14 = vld [vmem:[%s237_s5 + $0x8] sm:$0xff] }
  0x11   : > { %424 = vlog2.f32 %v259_v2  ;;  %v269_v8 = vmax.f32 %v267_v3, 1e-30  ;;  %v270_v10 = vmax.f32 %v268_v7, 1e-30  ;;  %v279_v21 = vsub.f32 1.0, %v255_v12 }
  0x12   : > { %426 = vlog2.f32 %v260_v6  ;;  %292 = vst [vmem:[%s252_s28] sm:$0xff] %v291_v9  ;;  %v280_v24 = vsub.f32 1.0, %v256_v14 }
  0x13   : > { %428 = vlog2.f32 %v269_v8 }
  0x14   : > { %430 = vlog2.f32 %v270_v10 }
  0x1e   : > { %v425_v11 = vpop.eup %424 }
  0x1f   : > { %v427_v13 = vpop.eup %426  ;;  %v262_v15 = vmul.f32 0.6931472, %v425_v11 }
  0x20   : > { %v429_v16 = vpop.eup %428  ;;  %v264_v17 = vmul.f32 0.6931472, %v427_v13 }
  0x21   : > { %v431_v18 = vpop.eup %430  ;;  %v265_v19 = vmax.f32 %v262_v15, -100.0  ;;  %v272_v20 = vmul.f32 0.6931472, %v429_v16 }
  0x22   : > { %v266_v22 = vmax.f32 %v264_v17, -100.0  ;;  %v274_v23 = vmul.f32 0.6931472, %v431_v18 }
  0x23   : > { %v275_v25 = vmax.f32 %v272_v20, -100.0  ;;  %v277_v26 = vmul.f32 %v265_v19, %v255_v12 }
  0x24   : > { %v276_v27 = vmax.f32 %v274_v23, -100.0  ;;  %v278_v28 = vmul.f32 %v266_v22, %v256_v14 }
  0x25   : > { %v281_v29 = vmul.f32 %v279_v21, %v275_v25 }
  0x26   : > { %v282_v30 = vmul.f32 %v280_v24, %v276_v27 }
  0x27   : > { %v283_v31 = vadd.f32 %v281_v29, %v277_v26 }
  0x28   : > { %v284_v32 = vadd.f32 %v282_v30, %v278_v28 }
  0x29   : > { %v285_v33 = vsub.f32 0.0, %v283_v31 }
  0x2a   : > { %v286_v34 = vsub.f32 0.0, %v284_v32 }
  0x2b   : > { %v287_v35 = vmul.f32 %v285_v33, %v257_v4 }
  0x2c   : > { %v288_v36 = vmul.f32 %v286_v34, %v258_v5 }
  0x2e   : > { %v289_v37 = vadd.f32 %v288_v36, %v287_v35 }
  0x30   : > { %290 = vst [vmem:[%s248_s8] sm:$0xff] %v289_v37 }
  0x31 PF: > { %s15_s15 = sadd.s32 1, %s438_s15  }
  0x32   : > { %p12_p5 = scmp.ge.s32.totalorder %s15_s15, 5  }
  0x34   :  { %14 = sbr.rel (!%p12_p5) target bundleno = 1 (0x1), region = 80 }

</bundles_post_ra>
